<compile_context>
chip_gen: v6e
topology: v6e:2x2x1
jax: 0.10.0
libtpu: 0.0.40
codegen_flags: <defaults>
</compile_context>

<pallas_src>
import jax
import jax.numpy as jnp
from jax.experimental import pallas as pl
from jax.experimental.pallas import tpu as pltpu


# ----------------------------------------------------------------------------
# Primary path: aliased no-op (zero data movement).
# ----------------------------------------------------------------------------
def _identity_noop_kernel(x_ref, o_ref):
    # Output buffer aliases the input buffer, so its bytes are already correct.
    # touch() creates a fake read/write dependency so the (otherwise empty)
    # kernel keeps the aliased output ordered correctly; no data is moved.
    del x_ref
    pltpu.touch(o_ref)


def _identity_noop(x):
    return pl.pallas_call(
        _identity_noop_kernel,
        out_shape=jax.ShapeDtypeStruct(x.shape, x.dtype),
        in_specs=[pl.BlockSpec(memory_space=pl.ANY)],   # leave input in HBM, no auto-DMA
        out_specs=pl.BlockSpec(memory_space=pl.ANY),    # output = same HBM buffer (alias)
        input_output_aliases={0: 0},
        cost_estimate=pl.CostEstimate(flops=0, transcendentals=0, bytes_accessed=0),
        compiler_params=pltpu.CompilerParams(has_side_effects=True),
    )(x)


# ----------------------------------------------------------------------------
# Fallback path: tiled lane-dense VMEM copy (only used if the no-op lowering
# is unavailable on the installed JAX/Mosaic version).
# ----------------------------------------------------------------------------
def _identity_copy_kernel(x_ref, o_ref):
    o_ref[...] = x_ref[...]


# Largest-first lane-dense candidate widths (multiples of 128).
_LANE_WIDTHS = (32768, 16384, 8192, 4096, 2048, 1024, 512, 256, 128)
_TARGET_BLOCK_BYTES = 4 * 1024 * 1024     # ~roofline plateau; 4 bufs -> ~16 MiB VMEM
_SPLIT_THRESHOLD_BYTES = 2 * 1024 * 1024  # above this, force >=2 grid steps (v7x 2 TCs)
_VMEM_LIMIT_BYTES = 32 * 1024 * 1024      # safe on v5e/v6e (128 MiB) and v7x (64 MiB)


def _identity_copy_2d(flat):
    rows, width = flat.shape
    itemsize = jnp.dtype(flat.dtype).itemsize
    # Sublane packing: 8 rows for f32, 16 for bf16, 32 for int8/fp8.
    sub = 8 * max(1, 4 // itemsize)
    total_bytes = rows * width * itemsize

    block_rows = max(sub, (_TARGET_BLOCK_BYTES // (width * itemsize)) // sub * sub)
    if total_bytes > _SPLIT_THRESHOLD_BYTES and rows >= 2 * sub:
        # Keep at least 2 grid steps so ("parallel",) shards across both v7x TCs.
        half = max(sub, (pl.cdiv(rows, 2) // sub) * sub)
        block_rows = min(block_rows, half)
    if rows <= block_rows:
        block_rows = rows  # single block == full array dims (always legal)

    grid = (pl.cdiv(rows, block_rows),)
    return pl.pallas_call(
        _identity_copy_kernel,
        out_shape=jax.ShapeDtypeStruct((rows, width), flat.dtype),
        grid_spec=pl.GridSpec(
            grid=grid,
            in_specs=[pl.BlockSpec((block_rows, width), lambda i: (i, 0))],
            out_specs=pl.BlockSpec((block_rows, width), lambda i: (i, 0)),
        ),
        input_output_aliases={0: 0},
        cost_estimate=pl.CostEstimate(
            flops=0, transcendentals=0,
            bytes_accessed=2 * rows * width * itemsize),
        compiler_params=pltpu.CompilerParams(
            dimension_semantics=("parallel",),
            vmem_limit_bytes=_VMEM_LIMIT_BYTES,
        ),
    )(flat)


def _identity_copy(x):
    total = x.size
    width = next((w for w in _LANE_WIDTHS if total % w == 0), None)
    if width is not None:
        rows = total // width
        return _identity_copy_2d(x.reshape(rows, width)).reshape(x.shape)
    itemsize = jnp.dtype(x.dtype).itemsize
    if total * itemsize <= _TARGET_BLOCK_BYTES:
        # Not lane-divisible: single full-array block (masked stores, but correct).
        return _identity_copy_2d(x.reshape(1, total)).reshape(x.shape)
    # TODO(synk): huge non-128-divisible arrays fall back to a pure passthrough.
    return x


# ----------------------------------------------------------------------------
# Public wrapper (IdentityMap.forward equivalent).
# ----------------------------------------------------------------------------
_NOOP_FAILED = False  # set once if the no-op path cannot lower on this JAX build


def identity_map(x, *args, **kwargs):
    """Pallas equivalent of IdentityMap.forward: returns x unchanged.

    Extra *args/**kwargs are accepted and ignored, matching the PyTorch module.
    For zero HBM traffic, call under jax.jit(identity_map, donate_argnums=0) so
    the aliased output reuses the donated input buffer; without donation XLA
    inserts (at most) one defensive copy.
    """
    del args, kwargs
    if x.size == 0:
        return x
    global _NOOP_FAILED
    if not _NOOP_FAILED:
        try:
            return _identity_noop(x)
        except Exception:  # pragma: no cover - only on builds lacking ANY/touch
            _NOOP_FAILED = True
    return _identity_copy(x)


# config property equivalent (module is stateless; nothing to translate).
IDENTITY_MAP_CONFIG = {"mm_projector_type": "identity"}


if __name__ == "__main__":
    key = jax.random.PRNGKey(0)
    # batch=2, seq=8, hidden=32 (small, consistent with a projector input).
    x = jax.random.normal(key, (2, 8, 32), dtype=jnp.float32)
    x_host = jax.device_get(x)  # snapshot for comparison (survives donation)

    # 1) Eager, non-donated call (XLA may add one defensive copy for the alias).
    y = jax.block_until_ready(identity_map(x, "unused_arg", unused_kwarg=True))
    assert y.shape == x.shape and y.dtype == x.dtype
    assert (jax.device_get(y) == x_host).all()

    # 2) Jitted + donated call: with the aliased no-op this is zero HBM traffic.
    ident_donated = jax.jit(identity_map, donate_argnums=0)
    x2 = jnp.asarray(x_host)  # fresh device buffer to donate
    y2 = jax.block_until_ready(ident_donated(x2))
    assert y2.shape == x.shape and y2.dtype == x.dtype
    assert (jax.device_get(y2) == x_host).all()

    print("KERNEL_OK")
</pallas_src>

<mosaic_0001>
module attributes {stable_mosaic.version = 11 : i64} {
  func.func @_identity_noop_kernel(%arg0: memref<2x8x32xf32, #tpu.memory_space<any>>, %arg1: memref<2x8x32xf32, #tpu.memory_space<any>>) attributes {dimension_semantics = [], scalar_prefetch = 0 : i64, scratch_operands = 0 : i64, tpu.core_type = #tpu.core_type<tc>} {
    return
  }
}

module attributes {stable_mosaic.version = 11 : i64} {
  func.func @_identity_copy_kernel(%arg0: i32, %arg1: memref<1x512xf32, #tpu.memory_space<vmem>>, %arg2: memref<1x512xf32, #tpu.memory_space<vmem>>) attributes {dimension_semantics = [#tpu.dimension_semantics<parallel>], iteration_bounds = array<i64: 1>, scalar_prefetch = 0 : i64, scratch_operands = 0 : i64, tpu.core_type = #tpu.core_type<tc>, window_params = [{transform_indices = @transform_0, window_bounds = array<i64: 1, 512>}, {transform_indices = @transform_1, window_bounds = array<i64: 1, 512>}]} {
    %c0 = arith.constant 0 : index
    %c0_0 = arith.constant 0 : index
    %0 = vector.load %arg1[%c0, %c0_0] : memref<1x512xf32, #tpu.memory_space<vmem>>, vector<1x512xf32>
    %c0_1 = arith.constant 0 : index
    %c0_2 = arith.constant 0 : index
    %1 = vector.load %arg2[%c0_1, %c0_2] : memref<1x512xf32, #tpu.memory_space<vmem>>, vector<1x512xf32>
    tpu.vector_store %arg2[%c0_1, %c0_2], %0 {strides = array<i32>} : memref<1x512xf32, #tpu.memory_space<vmem>>, vector<1x512xf32>,
    return
  }
  func.func @transform_0(%arg0: i32) -> (i32, i32) {
    %c0_i32 = arith.constant 0 : i32
    %c0_i32_0 = arith.constant 0 : i32
    return %arg0, %c0_i32 : i32, i32
  }
  func.func @transform_1(%arg0: i32) -> (i32, i32) {
    %c0_i32 = arith.constant 0 : i32
    %c0_i32_0 = arith.constant 0 : i32
    return %arg0, %c0_i32 : i32, i32
  }
}

</mosaic_0001>

<bundles_post_ra>
// kernel: tpu_custom_call.1
= control target key start
LH: loop header
LB: loop body
LE: loop exit
PB: predicated region body
PF: predicated region fallthrough
CT: control target
= control target key end

     0   :  { %s16_s0 = inlined_call_operand.hbm [shape: f32[2,8,32], index: 0, kind: input, shape index: {}, may-alias: {0,1}]   ;;  %s17_s1 = inlined_call_operand.hbm [shape: f32[2,8,32], index: 1, kind: output, shape index: {}, may-alias: {0,1}]  }

// kernel: tpu_custom_call.1
= control target key start
LH: loop header
LB: loop body
LE: loop exit
PB: predicated region body
PF: predicated region fallthrough
CT: control target
= control target key end

     0   :  { %6 = vsyncpa [#allocation3], 0  ;;  %s106_s0 = inlined_call_operand.hbm [shape: f32[1,512], index: 0, kind: input, shape index: {}, may-alias: {0,1}]   ;;  %s107_s1 = inlined_call_operand.hbm [shape: f32[1,512], index: 1, kind: output, shape index: {}, may-alias: {0,1}]  }
   0x1   :  { %7 = vsyncpa [#allocation4], 0  ;;  %s88_s6 = smov [#allocation2]  }
   0x2   :  { %s14_s7 = sshll.u32 %s88_s6, 4  ;;  %s15_s7 = int_to_ptr.vmem [resolvable:$true] %s14_s7 }
   0x3   :  { %s52_s8 = scalar_lea.vmem %s15_s7, 64  ;;  %p57_p1 = scmp.lt.s32.totalorder %s15_s7, %s15_s7 }
   0x4   :  { %p53_p0 = scmp.ne.s32.totalorder %s15_s7, %s52_s8  ;;  %p58_p2 = scmp.lt.s32.totalorder %s52_s8, %s52_s8 }
   0x6   :  { %p59_p3 = por %p58_p2, %p57_p1 }
   0x8   :  { %p60_p4 = pnand %p59_p3, %p53_p0 }
   0xa   :  { %63 = shalt.err (!%p60_p4)
}
   0xb   :  { %17 = dma.hbm_to_vmem [thread:$0]  %s106_s0, 64, %s15_s7, [#allocation3]  }
   0xc   :  { %84 = dma.done.wait [#allocation3], 64  }
   0xd   :  { %85 = vsyncadd [#allocation3], 4294967232  ;;  %v22_v0 = vlaneseq  ;;  %s89_s11 = smov [#allocation5]   ;;  %v21_v1 = vld [vmem:[#allocation2] sm:$0xf] }
   0xe   :  { %s33_s12 = sshll.u32 %s89_s11, 4  ;;  %s34_s12 = int_to_ptr.vmem [resolvable:$true] %s33_s12 }
   0xf   :  { %vm24_vm0 = vcmp.lt.s32.totalorder %v22_v0, 512  ;;  %s64_s13 = scalar_lea.vmem %s34_s12, 64  ;;  %p69_p6 = scmp.lt.s32.totalorder %s34_s12, %s34_s12 }
  0x10   :  { %26 = vst.msk [vmem:[#allocation5] sm:$0xf] %vm24_vm0, %v21_v1  ;;  %p65_p5 = scmp.ne.s32.totalorder %s34_s12, %s64_s13  ;;  %p70_p7 = scmp.lt.s32.totalorder %s64_s13, %s64_s13 }
  0x12   :  { %p71_p8 = por %p70_p7, %p69_p6 }
  0x14   :  { %p72_p9 = pnand %p71_p8, %p65_p5 }
  0x16   :  { %75 = shalt.err (!%p72_p9)
}
  0x17   :  { %36 = dma.vmem_to_hbm [thread:$0]  %s34_s12, 64, %s107_s1, [#allocation4]  }
  0x18   :  { %86 = dma.done.wait [#allocation4], 64  }
  0x19   :  { %87 = vsyncadd [#allocation4], 4294967232 }
  0x1a   :  { %40 = vsyncpa [#allocation3], 1 }
  0x1b   :  { %41 = vsyncpa [#allocation4], 1 }

</bundles_post_ra>
